<compile_context>
chip_gen: v7x
topology: tpu7x:2x2x1
jax: 0.10.0
libtpu: 0.0.40
codegen_flags: <defaults>
</compile_context>

<pallas_src>
import functools

import jax
import jax.numpy as jnp
from jax.experimental import pallas as pl
from jax.experimental.pallas import tpu as pltpu

_HAS_BUFFERED = hasattr(pl, "Buffered")


def _round_up(x, m):
    return (x + m - 1) // m * m


def _chip_defaults():
    """Per-generation tile / VMEM-limit defaults (performance only)."""
    kind = ""
    try:
        kind = jax.devices()[0].device_kind.lower()
    except Exception:  # pragma: no cover - defensive
        pass
    if ("v5e" in kind) or ("v5 lite" in kind) or ("v5lite" in kind):
        # v5e roofline ~240 flop/B: moderate tm is already balanced.
        return dict(tm_max=384, tn_max=2048, vmem_limit_bytes=80 * 1024 * 1024)
    if "v7" in kind:
        # v7x has 64 MiB VMEM per TensorCore: keep scoped VMEM under ~52 MiB.
        return dict(tm_max=768, tn_max=2048, vmem_limit_bytes=52 * 1024 * 1024)
    # v6e (and default): large tm makes the streamed decoder matmul compute-bound.
    return dict(tm_max=1024, tn_max=2048, vmem_limit_bytes=96 * 1024 * 1024)


# --------------------------------------------------------------------------
# Kernel
# --------------------------------------------------------------------------
def _mlm_head_kernel(x_ref, w1_ref, b1_ref, gamma_ref, beta_ref,
                     w2_ref, b2_ref, o_ref, h_ref, *, eps):
    # x_ref:     (tm, H)   tile of token rows (input dtype)
    # w1_ref:    (H, H)    dense weight (in, out), compute dtype (bf16/f32)
    # b1_ref:    (1, H)    dense bias (f32)
    # gamma_ref: (1, H)    LayerNorm weight (f32)
    # beta_ref:  (1, H)    LayerNorm bias (f32)
    # w2_ref:    (H, tn)   decoder weight tile (in, out), compute dtype
    # b2_ref:    (1, tn)   decoder bias tile (f32)
    # o_ref:     (tm, tn)  output logits tile
    # h_ref:     (tm, H)   VMEM scratch caching the transformed hidden
    #                      (compute dtype -> no per-vocab-step convert)

    # The transform runs once per row tile (vocab axis is innermost).
    @pl.when(pl.program_id(1) == 0)
    def _():
        x = x_ref[...].astype(w1_ref.dtype)
        h = jnp.dot(x, w1_ref[...], preferred_element_type=jnp.float32)
        h = h + b1_ref[...].astype(jnp.float32)

        # exact (erf-based) GELU, matching BERT "gelu"
        inv_sqrt2 = jnp.float32(0.7071067811865476)
        h = 0.5 * h * (1.0 + jax.lax.erf(h * inv_sqrt2))

        # LayerNorm over the hidden dim (f32 statistics)
        mean = jnp.mean(h, axis=-1, keepdims=True)
        var = jnp.mean((h - mean) * (h - mean), axis=-1, keepdims=True)
        h = (h - mean) * jax.lax.rsqrt(var + jnp.float32(eps))
        h = h * gamma_ref[...].astype(jnp.float32) + beta_ref[...].astype(jnp.float32)

        # single cast into the compute dtype, reused for all vocab tiles
        h_ref[...] = h.astype(h_ref.dtype)

    # Per-vocab-tile work: one MXU matmul (f32 accumulation) + bias.
    logits = jnp.dot(h_ref[...], w2_ref[...], preferred_element_type=jnp.float32)
    logits = logits + b2_ref[...].astype(jnp.float32)
    o_ref[...] = logits.astype(o_ref.dtype)


# --------------------------------------------------------------------------
# One-time weight preparation (hoisted out of the forward path)
# --------------------------------------------------------------------------
def prepare_params(params, *, weights_dtype=jnp.bfloat16, tn_max=None):
    """Transpose / cast / vocab-pad the weights ONCE (not per forward call).

    Returns (prepared_arrays, meta). `meta` carries the static tiling info.
    """
    if tn_max is None:
        tn_max = _chip_defaults()["tn_max"]
    wdt = jnp.dtype(weights_dtype)

    H = params["dense_w"].shape[0]
    V = params["dec_b"].shape[0]

    # vocab tile: 128-aligned (lane-dense stores), capped at tn_max
    tn = min(tn_max, _round_up(V, 128))
    Vp = _round_up(V, tn)

    w2_t = params["dec_w"].T.astype(wdt)                  # (H, V)
    b2 = params["dec_b"].astype(jnp.float32)[None, :]     # (1, V)
    if Vp != V:
        w2_t = jnp.pad(w2_t, ((0, 0), (0, Vp - V)))
        b2 = jnp.pad(b2, ((0, 0), (0, Vp - V)))

    prepared = dict(
        w1_t=params["dense_w"].T.astype(wdt),              # (H, H) (in, out)
        b1=params["dense_b"].astype(jnp.float32)[None, :],
        gamma=params["ln_gamma"].astype(jnp.float32)[None, :],
        beta=params["ln_beta"].astype(jnp.float32)[None, :],
        w2_t=w2_t,                                          # (H, Vp)
        b2=b2,                                              # (1, Vp)
    )
    meta = dict(H=H, V=V, Vp=Vp, tn=tn, compute_dtype=wdt)
    return prepared, meta


# --------------------------------------------------------------------------
# Forward wrapper
# --------------------------------------------------------------------------
def mlm_head(x, prepared, meta, *, eps=1e-12, tm_max=None,
             vmem_limit_bytes=None, out_dtype=None):
    """x: (B, S, H) -> logits (B, S, V)."""
    defaults = _chip_defaults()
    if tm_max is None:
        tm_max = defaults["tm_max"]
    if vmem_limit_bytes is None:
        vmem_limit_bytes = defaults["vmem_limit_bytes"]

    B, S, H = x.shape
    assert H == meta["H"], "hidden size mismatch with prepared params"
    V, Vp, tn = meta["V"], meta["Vp"], meta["tn"]
    wdt = meta["compute_dtype"]
    out_dtype = jnp.dtype(x.dtype) if out_dtype is None else jnp.dtype(out_dtype)

    M = B * S
    # Row tile: multiple of 8; rounded to a multiple of 256 when M allows so
    # the 256x256 MXU (v6e/v7x) is filled.  Padded rows are sliced off below.
    m8 = _round_up(M, 8)
    if m8 >= 256:
        tm = min(tm_max, _round_up(M, 256))
    else:
        tm = m8
    Mp = _round_up(M, tm)

    x2d = x.reshape(M, H)
    if Mp != M:
        x2d = jnp.pad(x2d, ((0, Mp - M), (0, 0)))

    grid = (Mp // tm, Vp // tn)

    wbytes = jnp.dtype(wdt).itemsize
    cost = pl.CostEstimate(
        flops=2 * Mp * H * H + 2 * Mp * H * Vp,
        transcendentals=Mp * H,
        bytes_accessed=(x2d.size * x2d.dtype.itemsize
                        + (prepared["w1_t"].size + prepared["w2_t"].size) * wbytes
                        + (prepared["b1"].size + prepared["gamma"].size
                           + prepared["beta"].size + prepared["b2"].size) * 4
                        + Mp * Vp * out_dtype.itemsize),
    )

    kernel = functools.partial(_mlm_head_kernel, eps=eps)

    def _invariant_spec(shape, single_buffer):
        idx = lambda i, j: (0,) * len(shape)
        if single_buffer and _HAS_BUFFERED:
            # Grid-invariant operand: no point double-buffering the full (H,H)
            # dense weight / LN params -> single buffer, save VMEM for tiles.
            return pl.BlockSpec(shape, idx, pipeline_mode=pl.Buffered(1))
        return pl.BlockSpec(shape, idx)

    def _build(single_buffer):
        in_specs = [
            pl.BlockSpec((tm, H), lambda i, j: (i, 0)),          # x rows
            _invariant_spec((H, H), single_buffer),               # dense W^T
            _invariant_spec((1, H), single_buffer),               # dense b
            _invariant_spec((1, H), single_buffer),               # ln gamma
            _invariant_spec((1, H), single_buffer),               # ln beta
            pl.BlockSpec((H, tn), lambda i, j: (0, j)),           # decoder W^T tile
            pl.BlockSpec((1, tn), lambda i, j: (0, j)),           # decoder bias tile
        ]
        return pl.pallas_call(
            kernel,
            out_shape=jax.ShapeDtypeStruct((Mp, Vp), out_dtype),
            grid=grid,
            in_specs=in_specs,
            out_specs=pl.BlockSpec((tm, tn), lambda i, j: (i, j)),
            scratch_shapes=[pltpu.VMEM((tm, H), wdt)],
            compiler_params=pltpu.CompilerParams(
                dimension_semantics=("parallel", "arbitrary"),
                vmem_limit_bytes=vmem_limit_bytes),
            cost_estimate=cost,
        )

    args = (x2d, prepared["w1_t"], prepared["b1"], prepared["gamma"],
            prepared["beta"], prepared["w2_t"], prepared["b2"])

    try:
        out2d = _build(single_buffer=True)(*args)
    except Exception:
        # Fallback if this Mosaic build rejects Buffered(1) single-buffering.
        out2d = _build(single_buffer=False)(*args)

    return out2d[:M, :V].reshape(B, S, V)


# --------------------------------------------------------------------------
# Reference + test harness
# --------------------------------------------------------------------------
def init_params(key, hidden_size, vocab_size):
    k1, k2 = jax.random.split(key, 2)
    return {
        "dense_w": 0.02 * jax.random.normal(k1, (hidden_size, hidden_size), jnp.float32),
        "dense_b": jnp.zeros((hidden_size,), jnp.float32),
        "ln_gamma": jnp.ones((hidden_size,), jnp.float32),
        "ln_beta": jnp.zeros((hidden_size,), jnp.float32),
        "dec_w": 0.02 * jax.random.normal(k2, (vocab_size, hidden_size), jnp.float32),
        "dec_b": jnp.zeros((vocab_size,), jnp.float32),
    }


def mlm_head_ref(x, params, eps=1e-12):
    """Pure-JAX reference (full-precision matmuls)."""
    with jax.default_matmul_precision("float32"):
        h = x @ params["dense_w"].T + params["dense_b"]
        h = 0.5 * h * (1.0 + jax.lax.erf(h / jnp.sqrt(2.0)))
        mean = jnp.mean(h, axis=-1, keepdims=True)
        var = jnp.mean((h - mean) ** 2, axis=-1, keepdims=True)
        h = (h - mean) * jax.lax.rsqrt(var + eps)
        h = h * params["ln_gamma"] + params["ln_beta"]
        return h @ params["dec_w"].T + params["dec_b"]


if __name__ == "__main__":
    key = jax.random.PRNGKey(0)
    kx, kp, kx2, kp2 = jax.random.split(key, 4)

    # 1) Canonical small shapes (tile-aligned), f32 compute path: exact check.
    B, S, H, V = 2, 8, 32, 128
    x = jax.random.normal(kx, (B, S, H), jnp.float32)
    params = init_params(kp, H, V)
    ref = mlm_head_ref(x, params)

    prep_f32, meta_f32 = prepare_params(params, weights_dtype=jnp.float32)
    out_f32 = jax.block_until_ready(mlm_head(x, prep_f32, meta_f32))
    assert out_f32.shape == (B, S, V)
    assert jnp.allclose(out_f32, ref, atol=2e-3, rtol=2e-3), "f32 mismatch vs reference"

    # 2) Default bf16 compute path (weights + cached hidden in bf16, f32 acc).
    prep_bf16, meta_bf16 = prepare_params(params)  # default weights_dtype=bf16
    out_bf16 = jax.block_until_ready(mlm_head(x, prep_bf16, meta_bf16))
    assert jnp.allclose(out_bf16, ref, atol=2e-2, rtol=2e-2), "bf16 mismatch vs reference"

    # 3) Non-aligned shapes exercise the padding / last-tile path (bf16 default).
    B2, S2, H2, V2 = 2, 7, 32, 200
    x2 = jax.random.normal(kx2, (B2, S2, H2), jnp.float32)
    params2 = init_params(kp2, H2, V2)
    prep2, meta2 = prepare_params(params2)
    out2 = jax.block_until_ready(mlm_head(x2, prep2, meta2))
    ref2 = mlm_head_ref(x2, params2)
    assert out2.shape == (B2, S2, V2)
    assert jnp.allclose(out2, ref2, atol=2e-2, rtol=2e-2), "padded mismatch vs reference"

    # 4) Optional bf16 logits output (halves the logits HBM writeback).
    out_bf16_logits = jax.block_until_ready(
        mlm_head(x, prep_bf16, meta_bf16, out_dtype=jnp.bfloat16))
    assert out_bf16_logits.dtype == jnp.bfloat16
    assert jnp.allclose(out_bf16_logits.astype(jnp.float32), ref,
                        atol=5e-2, rtol=5e-2), "bf16-logits mismatch vs reference"

    print("KERNEL_OK")
</pallas_src>

<mosaic_0001>
module attributes {stable_mosaic.version = 11 : i64} {
  func.func @_mlm_head_kernel(%arg0: i32, %arg1: i32, %arg2: memref<16x32xf32, #tpu.memory_space<vmem>>, %arg3: memref<32x32xf32, #tpu.memory_space<vmem>>, %arg4: memref<1x32xf32, #tpu.memory_space<vmem>>, %arg5: memref<1x32xf32, #tpu.memory_space<vmem>>, %arg6: memref<1x32xf32, #tpu.memory_space<vmem>>, %arg7: memref<32x128xf32, #tpu.memory_space<vmem>>, %arg8: memref<1x128xf32, #tpu.memory_space<vmem>>, %arg9: memref<16x128xf32, #tpu.memory_space<vmem>>, %arg10: memref<16x32xf32, #tpu.memory_space<vmem>>) attributes {dimension_semantics = [#tpu.dimension_semantics<parallel>, #tpu.dimension_semantics<arbitrary>], iteration_bounds = array<i64: 1, 1>, scalar_prefetch = 0 : i64, scratch_operands = 1 : i64, tpu.core_type = #tpu.core_type<tc>, window_params = [{transform_indices = @transform_0, window_bounds = array<i64: 16, 32>}, {pipeline_mode = #tpu.pipeline_mode<synchronous>, transform_indices = @transform_1, window_bounds = array<i64: 32, 32>}, {pipeline_mode = #tpu.pipeline_mode<synchronous>, transform_indices = @transform_2, window_bounds = array<i64: 1, 32>}, {pipeline_mode = #tpu.pipeline_mode<synchronous>, transform_indices = @transform_3, window_bounds = array<i64: 1, 32>}, {pipeline_mode = #tpu.pipeline_mode<synchronous>, transform_indices = @transform_4, window_bounds = array<i64: 1, 32>}, {transform_indices = @transform_5, window_bounds = array<i64: 32, 128>}, {transform_indices = @transform_6, window_bounds = array<i64: 1, 128>}, {transform_indices = @transform_7, window_bounds = array<i64: 16, 128>}]} {
    %c0_i32 = arith.constant 0 : i32
    %0 = arith.cmpi eq, %arg1, %c0_i32 : i32
    %1 = arith.extui %0 : i1 to i32
    %c0_i32_0 = arith.constant 0 : i32
    %2 = arith.cmpi ne, %1, %c0_i32_0 : i32
    scf.if %2 {
      %c0_8 = arith.constant 0 : index
      %c0_9 = arith.constant 0 : index
      %10 = vector.load %arg2[%c0_8, %c0_9] : memref<16x32xf32, #tpu.memory_space<vmem>>, vector<16x32xf32>
      %c0_10 = arith.constant 0 : index
      %c0_11 = arith.constant 0 : index
      %11 = vector.load %arg3[%c0_10, %c0_11] : memref<32x32xf32, #tpu.memory_space<vmem>>, vector<32x32xf32>
      %cst_12 = arith.constant dense<0.000000e+00> : vector<16x32xf32>
      %12 = tpu.matmul %10, %11, %cst_12 {dimension_numbers = #tpu.dot_dimension_numbers<[1], [0], [0], [1], [0, 0, 1, 1], [], []>} : vector<16x32xf32>, vector<32x32xf32>, vector<16x32xf32> -> vector<16x32xf32>
      %c0_13 = arith.constant 0 : index
      %c0_14 = arith.constant 0 : index
      %13 = vector.load %arg4[%c0_13, %c0_14] : memref<1x32xf32, #tpu.memory_space<vmem>>, vector<1x32xf32>
      %14 = vector.broadcast %13 : vector<1x32xf32> to vector<16x32xf32>
      %15 = arith.addf %12, %14 : vector<16x32xf32>
      %cst_15 = arith.constant 5.000000e-01 : f32
      %16 = vector.broadcast %cst_15 : f32 to vector<16x32xf32>
      %17 = arith.mulf %16, %15 : vector<16x32xf32>
      %cst_16 = arith.constant 0.707106769 : f32
      %18 = vector.broadcast %cst_16 : f32 to vector<16x32xf32>
      %19 = arith.mulf %15, %18 : vector<16x32xf32>
      %20 = math.erf %19 : vector<16x32xf32>
      %cst_17 = arith.constant 1.000000e+00 : f32
      %21 = vector.broadcast %cst_17 : f32 to vector<16x32xf32>
      %22 = arith.addf %21, %20 : vector<16x32xf32>
      %23 = arith.mulf %17, %22 : vector<16x32xf32>
      %cst_18 = arith.constant dense<0.000000e+00> : vector<16xf32>
      %24 = vector.multi_reduction <add>, %23, %cst_18 [1] : vector<16x32xf32> to vector<16xf32>
      %25 = vector.shape_cast %24 : vector<16xf32> to vector<16x1xf32>
      %cst_19 = arith.constant 3.200000e+01 : f32
      %26 = vector.broadcast %cst_19 : f32 to vector<16x1xf32>
      %27 = arith.divf %25, %26 : vector<16x1xf32>
      %28 = vector.broadcast %27 : vector<16x1xf32> to vector<16x32xf32>
      %29 = arith.subf %23, %28 : vector<16x32xf32>
      %30 = vector.broadcast %27 : vector<16x1xf32> to vector<16x32xf32>
      %31 = arith.subf %23, %30 : vector<16x32xf32>
      %32 = arith.mulf %29, %31 : vector<16x32xf32>
      %cst_20 = arith.constant dense<0.000000e+00> : vector<16xf32>
      %33 = vector.multi_reduction <add>, %32, %cst_20 [1] : vector<16x32xf32> to vector<16xf32>
      %34 = vector.shape_cast %33 : vector<16xf32> to vector<16x1xf32>
      %cst_21 = arith.constant 3.200000e+01 : f32
      %35 = vector.broadcast %cst_21 : f32 to vector<16x1xf32>
      %36 = arith.divf %34, %35 : vector<16x1xf32>
      %37 = vector.broadcast %27 : vector<16x1xf32> to vector<16x32xf32>
      %38 = arith.subf %23, %37 : vector<16x32xf32>
      %cst_22 = arith.constant 9.99999996E-13 : f32
      %39 = vector.broadcast %cst_22 : f32 to vector<16x1xf32>
      %40 = arith.addf %36, %39 : vector<16x1xf32>
      %41 = math.rsqrt %40 : vector<16x1xf32>
      %42 = vector.broadcast %41 : vector<16x1xf32> to vector<16x32xf32>
      %43 = arith.mulf %38, %42 : vector<16x32xf32>
      %c0_23 = arith.constant 0 : index
      %c0_24 = arith.constant 0 : index
      %44 = vector.load %arg5[%c0_23, %c0_24] : memref<1x32xf32, #tpu.memory_space<vmem>>, vector<1x32xf32>
      %45 = vector.broadcast %44 : vector<1x32xf32> to vector<16x32xf32>
      %46 = arith.mulf %43, %45 : vector<16x32xf32>
      %c0_25 = arith.constant 0 : index
      %c0_26 = arith.constant 0 : index
      %47 = vector.load %arg6[%c0_25, %c0_26] : memref<1x32xf32, #tpu.memory_space<vmem>>, vector<1x32xf32>
      %48 = vector.broadcast %47 : vector<1x32xf32> to vector<16x32xf32>
      %49 = arith.addf %46, %48 : vector<16x32xf32>
      %c0_27 = arith.constant 0 : index
      %c0_28 = arith.constant 0 : index
      %50 = vector.load %arg10[%c0_27, %c0_28] : memref<16x32xf32, #tpu.memory_space<vmem>>, vector<16x32xf32>
      tpu.vector_store %arg10[%c0_27, %c0_28], %49 {strides = array<i32>} : memref<16x32xf32, #tpu.memory_space<vmem>>, vector<16x32xf32>,
    } else {
    }
    %c0 = arith.constant 0 : index
    %c0_1 = arith.constant 0 : index
    %3 = vector.load %arg10[%c0, %c0_1] : memref<16x32xf32, #tpu.memory_space<vmem>>, vector<16x32xf32>
    %c0_2 = arith.constant 0 : index
    %c0_3 = arith.constant 0 : index
    %4 = vector.load %arg7[%c0_2, %c0_3] : memref<32x128xf32, #tpu.memory_space<vmem>>, vector<32x128xf32>
    %cst = arith.constant dense<0.000000e+00> : vector<16x128xf32>
    %5 = tpu.matmul %3, %4, %cst {dimension_numbers = #tpu.dot_dimension_numbers<[1], [0], [0], [1], [0, 0, 1, 1], [], []>} : vector<16x32xf32>, vector<32x128xf32>, vector<16x128xf32> -> vector<16x128xf32>
    %c0_4 = arith.constant 0 : index
    %c0_5 = arith.constant 0 : index
    %6 = vector.load %arg8[%c0_4, %c0_5] : memref<1x128xf32, #tpu.memory_space<vmem>>, vector<1x128xf32>
    %7 = vector.broadcast %6 : vector<1x128xf32> to vector<16x128xf32>
    %8 = arith.addf %5, %7 : vector<16x128xf32>
    %c0_6 = arith.constant 0 : index
    %c0_7 = arith.constant 0 : index
    %9 = vector.load %arg9[%c0_6, %c0_7] : memref<16x128xf32, #tpu.memory_space<vmem>>, vector<16x128xf32>
    tpu.vector_store %arg9[%c0_6, %c0_7], %8 {strides = array<i32>} : memref<16x128xf32, #tpu.memory_space<vmem>>, vector<16x128xf32>,
    return
  }
  func.func @transform_0(%arg0: i32, %arg1: i32) -> (i32, i32) {
    %c0_i32 = arith.constant 0 : i32
    %c0_i32_0 = arith.constant 0 : i32
    return %arg0, %c0_i32 : i32, i32
  }
  func.func @transform_1(%arg0: i32, %arg1: i32) -> (i32, i32) {
    %c0_i32 = arith.constant 0 : i32
    %c0_i32_0 = arith.constant 0 : i32
    %c0_i32_1 = arith.constant 0 : i32
    return %c0_i32, %c0_i32_0 : i32, i32
  }
  func.func @transform_2(%arg0: i32, %arg1: i32) -> (i32, i32) {
    %c0_i32 = arith.constant 0 : i32
    %c0_i32_0 = arith.constant 0 : i32
    %c0_i32_1 = arith.constant 0 : i32
    return %c0_i32, %c0_i32_0 : i32, i32
  }
  func.func @transform_3(%arg0: i32, %arg1: i32) -> (i32, i32) {
    %c0_i32 = arith.constant 0 : i32
    %c0_i32_0 = arith.constant 0 : i32
    %c0_i32_1 = arith.constant 0 : i32
    return %c0_i32, %c0_i32_0 : i32, i32
  }
  func.func @transform_4(%arg0: i32, %arg1: i32) -> (i32, i32) {
    %c0_i32 = arith.constant 0 : i32
    %c0_i32_0 = arith.constant 0 : i32
    %c0_i32_1 = arith.constant 0 : i32
    return %c0_i32, %c0_i32_0 : i32, i32
  }
  func.func @transform_5(%arg0: i32, %arg1: i32) -> (i32, i32) {
    %c0_i32 = arith.constant 0 : i32
    %c0_i32_0 = arith.constant 0 : i32
    return %c0_i32, %arg1 : i32, i32
  }
  func.func @transform_6(%arg0: i32, %arg1: i32) -> (i32, i32) {
    %c0_i32 = arith.constant 0 : i32
    %c0_i32_0 = arith.constant 0 : i32
    return %c0_i32, %arg1 : i32, i32
  }
  func.func @transform_7(%arg0: i32, %arg1: i32) -> (i32, i32) {
    %c0_i32 = arith.constant 0 : i32
    return %arg0, %arg1 : i32, i32
  }
}

module attributes {stable_mosaic.version = 11 : i64} {
  func.func @_mlm_head_kernel(%arg0: i32, %arg1: i32, %arg2: memref<16x32xf32, #tpu.memory_space<vmem>>, %arg3: memref<32x32xf32, #tpu.memory_space<vmem>>, %arg4: memref<1x32xf32, #tpu.memory_space<vmem>>, %arg5: memref<1x32xf32, #tpu.memory_space<vmem>>, %arg6: memref<1x32xf32, #tpu.memory_space<vmem>>, %arg7: memref<32x128xf32, #tpu.memory_space<vmem>>, %arg8: memref<1x128xf32, #tpu.memory_space<vmem>>, %arg9: memref<16x128xf32, #tpu.memory_space<vmem>>, %arg10: memref<16x32xf32, #tpu.memory_space<vmem>>) attributes {dimension_semantics = [#tpu.dimension_semantics<parallel>, #tpu.dimension_semantics<arbitrary>], iteration_bounds = array<i64: 1, 1>, scalar_prefetch = 0 : i64, scratch_operands = 1 : i64, tpu.core_type = #tpu.core_type<tc>, window_params = [{transform_indices = @transform_0, window_bounds = array<i64: 16, 32>}, {pipeline_mode = #tpu.pipeline_mode<synchronous>, transform_indices = @transform_1, window_bounds = array<i64: 32, 32>}, {pipeline_mode = #tpu.pipeline_mode<synchronous>, transform_indices = @transform_2, window_bounds = array<i64: 1, 32>}, {pipeline_mode = #tpu.pipeline_mode<synchronous>, transform_indices = @transform_3, window_bounds = array<i64: 1, 32>}, {pipeline_mode = #tpu.pipeline_mode<synchronous>, transform_indices = @transform_4, window_bounds = array<i64: 1, 32>}, {transform_indices = @transform_5, window_bounds = array<i64: 32, 128>}, {transform_indices = @transform_6, window_bounds = array<i64: 1, 128>}, {transform_indices = @transform_7, window_bounds = array<i64: 16, 128>}]} {
    %c0_i32 = arith.constant 0 : i32
    %0 = arith.cmpi eq, %arg1, %c0_i32 : i32
    %1 = arith.extui %0 : i1 to i32
    %c0_i32_0 = arith.constant 0 : i32
    %2 = arith.cmpi ne, %1, %c0_i32_0 : i32
    scf.if %2 {
      %c0_8 = arith.constant 0 : index
      %c0_9 = arith.constant 0 : index
      %10 = vector.load %arg2[%c0_8, %c0_9] : memref<16x32xf32, #tpu.memory_space<vmem>>, vector<16x32xf32>
      %c0_10 = arith.constant 0 : index
      %c0_11 = arith.constant 0 : index
      %11 = vector.load %arg3[%c0_10, %c0_11] : memref<32x32xf32, #tpu.memory_space<vmem>>, vector<32x32xf32>
      %cst_12 = arith.constant dense<0.000000e+00> : vector<16x32xf32>
      %12 = tpu.matmul %10, %11, %cst_12 {dimension_numbers = #tpu.dot_dimension_numbers<[1], [0], [0], [1], [0, 0, 1, 1], [], []>} : vector<16x32xf32>, vector<32x32xf32>, vector<16x32xf32> -> vector<16x32xf32>
      %c0_13 = arith.constant 0 : index
      %c0_14 = arith.constant 0 : index
      %13 = vector.load %arg4[%c0_13, %c0_14] : memref<1x32xf32, #tpu.memory_space<vmem>>, vector<1x32xf32>
      %14 = vector.broadcast %13 : vector<1x32xf32> to vector<16x32xf32>
      %15 = arith.addf %12, %14 : vector<16x32xf32>
      %cst_15 = arith.constant 5.000000e-01 : f32
      %16 = vector.broadcast %cst_15 : f32 to vector<16x32xf32>
      %17 = arith.mulf %16, %15 : vector<16x32xf32>
      %cst_16 = arith.constant 0.707106769 : f32
      %18 = vector.broadcast %cst_16 : f32 to vector<16x32xf32>
      %19 = arith.mulf %15, %18 : vector<16x32xf32>
      %20 = math.erf %19 : vector<16x32xf32>
      %cst_17 = arith.constant 1.000000e+00 : f32
      %21 = vector.broadcast %cst_17 : f32 to vector<16x32xf32>
      %22 = arith.addf %21, %20 : vector<16x32xf32>
      %23 = arith.mulf %17, %22 : vector<16x32xf32>
      %cst_18 = arith.constant dense<0.000000e+00> : vector<16xf32>
      %24 = vector.multi_reduction <add>, %23, %cst_18 [1] : vector<16x32xf32> to vector<16xf32>
      %25 = vector.shape_cast %24 : vector<16xf32> to vector<16x1xf32>
      %cst_19 = arith.constant 3.200000e+01 : f32
      %26 = vector.broadcast %cst_19 : f32 to vector<16x1xf32>
      %27 = arith.divf %25, %26 : vector<16x1xf32>
      %28 = vector.broadcast %27 : vector<16x1xf32> to vector<16x32xf32>
      %29 = arith.subf %23, %28 : vector<16x32xf32>
      %30 = vector.broadcast %27 : vector<16x1xf32> to vector<16x32xf32>
      %31 = arith.subf %23, %30 : vector<16x32xf32>
      %32 = arith.mulf %29, %31 : vector<16x32xf32>
      %cst_20 = arith.constant dense<0.000000e+00> : vector<16xf32>
      %33 = vector.multi_reduction <add>, %32, %cst_20 [1] : vector<16x32xf32> to vector<16xf32>
      %34 = vector.shape_cast %33 : vector<16xf32> to vector<16x1xf32>
      %cst_21 = arith.constant 3.200000e+01 : f32
      %35 = vector.broadcast %cst_21 : f32 to vector<16x1xf32>
      %36 = arith.divf %34, %35 : vector<16x1xf32>
      %37 = vector.broadcast %27 : vector<16x1xf32> to vector<16x32xf32>
      %38 = arith.subf %23, %37 : vector<16x32xf32>
      %cst_22 = arith.constant 9.99999996E-13 : f32
      %39 = vector.broadcast %cst_22 : f32 to vector<16x1xf32>
      %40 = arith.addf %36, %39 : vector<16x1xf32>
      %41 = math.rsqrt %40 : vector<16x1xf32>
      %42 = vector.broadcast %41 : vector<16x1xf32> to vector<16x32xf32>
      %43 = arith.mulf %38, %42 : vector<16x32xf32>
      %c0_23 = arith.constant 0 : index
      %c0_24 = arith.constant 0 : index
      %44 = vector.load %arg5[%c0_23, %c0_24] : memref<1x32xf32, #tpu.memory_space<vmem>>, vector<1x32xf32>
      %45 = vector.broadcast %44 : vector<1x32xf32> to vector<16x32xf32>
      %46 = arith.mulf %43, %45 : vector<16x32xf32>
      %c0_25 = arith.constant 0 : index
      %c0_26 = arith.constant 0 : index
      %47 = vector.load %arg6[%c0_25, %c0_26] : memref<1x32xf32, #tpu.memory_space<vmem>>, vector<1x32xf32>
      %48 = vector.broadcast %47 : vector<1x32xf32> to vector<16x32xf32>
      %49 = arith.addf %46, %48 : vector<16x32xf32>
      %c0_27 = arith.constant 0 : index
      %c0_28 = arith.constant 0 : index
      %50 = vector.load %arg10[%c0_27, %c0_28] : memref<16x32xf32, #tpu.memory_space<vmem>>, vector<16x32xf32>
      tpu.vector_store %arg10[%c0_27, %c0_28], %49 {strides = array<i32>} : memref<16x32xf32, #tpu.memory_space<vmem>>, vector<16x32xf32>,
    } else {
    }
    %c0 = arith.constant 0 : index
    %c0_1 = arith.constant 0 : index
    %3 = vector.load %arg10[%c0, %c0_1] : memref<16x32xf32, #tpu.memory_space<vmem>>, vector<16x32xf32>
    %c0_2 = arith.constant 0 : index
    %c0_3 = arith.constant 0 : index
    %4 = vector.load %arg7[%c0_2, %c0_3] : memref<32x128xf32, #tpu.memory_space<vmem>>, vector<32x128xf32>
    %cst = arith.constant dense<0.000000e+00> : vector<16x128xf32>
    %5 = tpu.matmul %3, %4, %cst {dimension_numbers = #tpu.dot_dimension_numbers<[1], [0], [0], [1], [0, 0, 1, 1], [], []>} : vector<16x32xf32>, vector<32x128xf32>, vector<16x128xf32> -> vector<16x128xf32>
    %c0_4 = arith.constant 0 : index
    %c0_5 = arith.constant 0 : index
    %6 = vector.load %arg8[%c0_4, %c0_5] : memref<1x128xf32, #tpu.memory_space<vmem>>, vector<1x128xf32>
    %7 = vector.broadcast %6 : vector<1x128xf32> to vector<16x128xf32>
    %8 = arith.addf %5, %7 : vector<16x128xf32>
    %c0_6 = arith.constant 0 : index
    %c0_7 = arith.constant 0 : index
    %9 = vector.load %arg9[%c0_6, %c0_7] : memref<16x128xf32, #tpu.memory_space<vmem>>, vector<16x128xf32>
    tpu.vector_store %arg9[%c0_6, %c0_7], %8 {strides = array<i32>} : memref<16x128xf32, #tpu.memory_space<vmem>>, vector<16x128xf32>,
    return
  }
  func.func @transform_0(%arg0: i32, %arg1: i32) -> (i32, i32) {
    %c0_i32 = arith.constant 0 : i32
    %c0_i32_0 = arith.constant 0 : i32
    return %arg0, %c0_i32 : i32, i32
  }
  func.func @transform_1(%arg0: i32, %arg1: i32) -> (i32, i32) {
    %c0_i32 = arith.constant 0 : i32
    %c0_i32_0 = arith.constant 0 : i32
    %c0_i32_1 = arith.constant 0 : i32
    return %c0_i32, %c0_i32_0 : i32, i32
  }
  func.func @transform_2(%arg0: i32, %arg1: i32) -> (i32, i32) {
    %c0_i32 = arith.constant 0 : i32
    %c0_i32_0 = arith.constant 0 : i32
    %c0_i32_1 = arith.constant 0 : i32
    return %c0_i32, %c0_i32_0 : i32, i32
  }
  func.func @transform_3(%arg0: i32, %arg1: i32) -> (i32, i32) {
    %c0_i32 = arith.constant 0 : i32
    %c0_i32_0 = arith.constant 0 : i32
    %c0_i32_1 = arith.constant 0 : i32
    return %c0_i32, %c0_i32_0 : i32, i32
  }
  func.func @transform_4(%arg0: i32, %arg1: i32) -> (i32, i32) {
    %c0_i32 = arith.constant 0 : i32
    %c0_i32_0 = arith.constant 0 : i32
    %c0_i32_1 = arith.constant 0 : i32
    return %c0_i32, %c0_i32_0 : i32, i32
  }
  func.func @transform_5(%arg0: i32, %arg1: i32) -> (i32, i32) {
    %c0_i32 = arith.constant 0 : i32
    %c0_i32_0 = arith.constant 0 : i32
    return %c0_i32, %arg1 : i32, i32
  }
  func.func @transform_6(%arg0: i32, %arg1: i32) -> (i32, i32) {
    %c0_i32 = arith.constant 0 : i32
    %c0_i32_0 = arith.constant 0 : i32
    return %c0_i32, %arg1 : i32, i32
  }
  func.func @transform_7(%arg0: i32, %arg1: i32) -> (i32, i32) {
    %c0_i32 = arith.constant 0 : i32
    return %arg0, %arg1 : i32, i32
  }
}

</mosaic_0001>

<bundles_post_ra>
// kernel: tpu_custom_call.1
= control target key start
LH: loop header
LB: loop body
LE: loop exit
PB: predicated region body
PF: predicated region fallthrough
CT: control target
= control target key end

     0   :  { %12 = vsyncpa [#allocation4], 0  ;;  %s832_s0 = inlined_call_operand.hbm [shape: f32[16,32], index: 0, kind: input, shape index: {}]   ;;  %s833_s1 = inlined_call_operand.hbm [shape: f32[32,32], index: 1, kind: input, shape index: {}]   ;;  %s834_s2 = inlined_call_operand.hbm [shape: f32[1,32], index: 2, kind: input, shape index: {}]   ;;  %s835_s3 = inlined_call_operand.hbm [shape: f32[1,32], index: 3, kind: input, shape index: {}]   ;;  %s836_s4 = inlined_call_operand.hbm [shape: f32[1,32], index: 4, kind: input, shape index: {}]   ;;  %s837_s5 = inlined_call_operand.hbm [shape: f32[32,128], index: 5, kind: input, shape index: {}]   ;;  %s838_s6 = inlined_call_operand.hbm [shape: f32[1,128], index: 6, kind: input, shape index: {}]   ;;  %s839_s7 = inlined_call_operand.hbm [shape: f32[16,128], index: 7, kind: output, shape index: {}]  }
   0x1   :  { %13 = vsyncpa [#allocation7], 0 }
   0x2   :  { %14 = vsyncpa [#allocation10], 0 }
   0x3   :  { %15 = vsyncpa [#allocation13], 0 }
   0x4   :  { %16 = vsyncpa [#allocation5], 0  ;;  %s649_s24 = smov [#allocation6]   ;;  %s650_s26 = smov [#allocation9]  }
   0x5   :  { %s34_s25 = sshll.u32 %s649_s24, 4  ;;  %s57_s27 = sshll.u32 %s650_s26, 4  ;;  %s35_s25 = int_to_ptr.vmem [resolvable:$true] %s34_s25  ;;  %s699_s27 = int_to_ptr.vmem [resolvable:$true] %s57_s27 }
   0x6   :  { %s463_s30 = scalar_lea.hbm %s833_s1, 512 }
   0x7   :  { %p464_p0 = scmp.ne.s32.totalorder %s833_s1, %s463_s30  ;;  %p467_p1 = scmp.lt.u32.totalorder %s463_s30, %s833_s1 }
   0x9   :  { %p469_p2 = pnand %p467_p1, %p464_p0 }
   0xb   :  { %472 = shalt.err (!%p469_p2)
}
   0xc   :  { %s473_s12 = scalar_lea.vmem %s35_s25, 512  ;;  %p478_p4 = scmp.lt.s32.totalorder %s35_s25, %s35_s25 }
   0xd   :  { %p474_p3 = scmp.ne.s32.totalorder %s35_s25, %s473_s12  ;;  %p479_p5 = scmp.lt.s32.totalorder %s473_s12, %s473_s12 }
   0xf   :  { %p480_p6 = por %p479_p5, %p478_p4 }
  0x11   :  { %p481_p7 = pnand %p480_p6, %p474_p3 }
  0x13   :  { %484 = shalt.err (!%p481_p7)
}
  0x14   :  { %s651_s13 = smov 128   ;;  %s652_s14 = smov 8  }
  0x15   :  { %40 = dma.hbm_to_vmem [thread:$0]  %s833_s1, 512, %s35_s25, [#allocation7], %s651_s13, %s651_s13, %s652_s14  }
  0x16   :  { %s485_s19 = scalar_lea.hbm %s835_s3, 16 }
  0x17   :  { %p486_p8 = scmp.ne.s32.totalorder %s835_s3, %s485_s19  ;;  %p489_p9 = scmp.lt.u32.totalorder %s485_s19, %s835_s3 }
  0x19   :  { %p491_p10 = pnand %p489_p9, %p486_p8 }
  0x1b   :  { %494 = shalt.err (!%p491_p10)
}
  0x1c   :  { %s495_s24 = scalar_lea.vmem %s699_s27, 16  ;;  %s499_s1 = scalar_lea.vmem %s699_s27, 32 }
  0x1d   :  { %p496_p11 = scmp.ne.s32.totalorder %s699_s27, %s495_s24  ;;  %p500_p12 = scmp.lt.s32.totalorder %s699_s27, %s699_s27 }
  0x1e   :  { %p501_p13 = scmp.lt.s32.totalorder %s499_s1, %s495_s24 }
  0x20   :  { %p502_p0 = por %p501_p13, %p500_p12 }
  0x22   :  { %p503_p1 = pnand %p502_p0, %p496_p11 }
  0x24   :  { %506 = shalt.err (!%p503_p1)
}
  0x25   :  { %60 = dma.hbm_to_vmem [thread:$0]  %s835_s3, 16, %s699_s27, [#allocation10]  }
  0x26   :  { %s653_s28 = smov [#allocation12]   ;;  %s654_s30 = smov [#allocation3]  }
  0x27   :  { %s76_s29 = sshll.u32 %s653_s28, 4  ;;  %s22_s8 = sshll.u32 %s654_s30, 4  ;;  %s77_s29 = int_to_ptr.vmem [resolvable:$true] %s76_s29  ;;  %s734_s8 = int_to_ptr.vmem [resolvable:$true] %s22_s8 }
  0x28   :  { %s507_s11 = scalar_lea.hbm %s837_s5, 512 }
  0x29   :  { %p508_p2 = scmp.ne.s32.totalorder %s837_s5, %s507_s11  ;;  %p511_p3 = scmp.lt.u32.totalorder %s507_s11, %s837_s5 }
  0x2b   :  { %p513_p4 = pnand %p511_p3, %p508_p2 }
  0x2d   :  { %516 = shalt.err (!%p513_p4)
}
  0x2e   :  { %s517_s3 = scalar_lea.vmem %s77_s29, 512  ;;  %p522_p6 = scmp.lt.s32.totalorder %s77_s29, %s77_s29 }
  0x2f   :  { %p518_p5 = scmp.ne.s32.totalorder %s77_s29, %s517_s3  ;;  %p523_p7 = scmp.lt.s32.totalorder %s517_s3, %s517_s3 }
  0x31   :  { %p524_p8 = por %p523_p7, %p522_p6 }
  0x33   :  { %p525_p9 = pnand %p524_p8, %p518_p5 }
  0x35   :  { %528 = shalt.err (!%p525_p9)
}
  0x36   :  { %82 = dma.hbm_to_vmem [thread:$0]  %s837_s5, 512, %s77_s29, [#allocation13], %s651_s13, %s651_s13, %s652_s14  }
  0x37   :  { %s529_s21 = scalar_lea.hbm %s832_s0, 256 }
  0x38   :  { %p530_p10 = scmp.ne.s32.totalorder %s832_s0, %s529_s21  ;;  %p533_p11 = scmp.lt.u32.totalorder %s529_s21, %s832_s0 }
  0x3a   :  { %p535_p12 = pnand %p533_p11, %p530_p10 }
  0x3c   :  { %538 = shalt.err (!%p535_p12)
}
  0x3d   :  { %s539_s25 = scalar_lea.vmem %s734_s8, 256  ;;  %p544_p0 = scmp.lt.s32.totalorder %s734_s8, %s734_s8 }
  0x3e   :  { %p540_p13 = scmp.ne.s32.totalorder %s734_s8, %s539_s25  ;;  %p545_p1 = scmp.lt.s32.totalorder %s539_s25, %s539_s25 }
  0x40   :  { %p546_p2 = por %p545_p1, %p544_p0 }
  0x42   :  { %p547_p3 = pnand %p546_p2, %p540_p13 }
  0x44   :  { %550 = shalt.err (!%p547_p3)
}
  0x45   :  { %28 = dma.hbm_to_vmem [thread:$0]  %s832_s0, 256, %s734_s8, [#allocation4], %s651_s13, %s651_s13, %s652_s14  }
  0x46   :  { %s655_s28 = smov [#allocation8]   ;;  %s656_s30 = smov [#allocation11]  }
  0x47   :  { %s47_s29 = sshll.u32 %s655_s28, 4  ;;  %s67_s9 = sshll.u32 %s656_s30, 4  ;;  %s48_s29 = int_to_ptr.vmem [resolvable:$true] %s47_s29  ;;  %s68_s9 = int_to_ptr.vmem [resolvable:$true] %s67_s9 }
  0x48   :  { %s551_s12 = scalar_lea.hbm %s834_s2, 16 }
  0x49   :  { %p552_p4 = scmp.ne.s32.totalorder %s834_s2, %s551_s12  ;;  %p555_p5 = scmp.lt.u32.totalorder %s551_s12, %s834_s2 }
  0x4b   :  { %p557_p6 = pnand %p555_p5, %p552_p4 }
  0x4d   :  { %560 = shalt.err (!%p557_p6)
}
  0x4e   :  { %s561_s0 = scalar_lea.vmem %s48_s29, 16  ;;  %s565_s8 = scalar_lea.vmem %s48_s29, 32 }
  0x4f   :  { %p562_p7 = scmp.ne.s32.totalorder %s48_s29, %s561_s0  ;;  %p566_p8 = scmp.lt.s32.totalorder %s48_s29, %s48_s29 }
  0x50   :  { %p567_p9 = scmp.lt.s32.totalorder %s565_s8, %s561_s0 }
  0x52   :  { %p568_p10 = por %p567_p9, %p566_p8 }
  0x54   :  { %p569_p11 = pnand %p568_p10, %p562_p7 }
  0x56   :  { %572 = shalt.err (!%p569_p11)
}
  0x57   :  { %50 = dma.hbm_to_vmem [thread:$0]  %s834_s2, 16, %s48_s29, [#allocation7]  }
  0x58   :  { %s573_s21 = scalar_lea.hbm %s836_s4, 16 }
  0x59   :  { %p574_p12 = scmp.ne.s32.totalorder %s836_s4, %s573_s21  ;;  %p577_p13 = scmp.lt.u32.totalorder %s573_s21, %s836_s4 }
  0x5b   :  { %p579_p0 = pnand %p577_p13, %p574_p12 }
  0x5d   :  { %582 = shalt.err (!%p579_p0)
}
  0x5e   :  { %s583_s25 = scalar_lea.vmem %s68_s9, 16  ;;  %s587_s5 = scalar_lea.vmem %s68_s9, 32 }
  0x5f   :  { %p584_p1 = scmp.ne.s32.totalorder %s68_s9, %s583_s25  ;;  %p588_p2 = scmp.lt.s32.totalorder %s68_s9, %s68_s9 }
  0x60   :  { %p589_p3 = scmp.lt.s32.totalorder %s587_s5, %s583_s25 }
  0x62   :  { %p590_p4 = por %p589_p3, %p588_p2 }
  0x64   :  { %p591_p5 = pnand %p590_p4, %p584_p1 }
  0x66   :  { %594 = shalt.err (!%p591_p5)
}
  0x67   :  { %70 = dma.hbm_to_vmem [thread:$0]  %s836_s4, 16, %s68_s9, [#allocation10]  }
  0x68   :  { %s657_s28 = smov [#allocation14]   ;;  %s595_s11 = scalar_lea.hbm %s838_s6, 16 }
  0x69   :  { %s89_s29 = sshll.u32 %s657_s28, 4  ;;  %p596_p6 = scmp.ne.s32.totalorder %s838_s6, %s595_s11  ;;  %s90_s29 = int_to_ptr.vmem [resolvable:$true] %s89_s29 }
  0x6a   :  { %p599_p7 = scmp.lt.u32.totalorder %s595_s11, %s838_s6 }
  0x6c   :  { %p601_p8 = pnand %p599_p7, %p596_p6 }
  0x6e   :  { %604 = shalt.err (!%p601_p8)
}
  0x6f   :  { %s605_s3 = scalar_lea.vmem %s90_s29, 16  ;;  %s609_s4 = scalar_lea.vmem %s90_s29, 32 }
  0x70   :  { %p606_p9 = scmp.ne.s32.totalorder %s90_s29, %s605_s3  ;;  %p610_p10 = scmp.lt.s32.totalorder %s90_s29, %s90_s29 }
  0x71   :  { %p611_p11 = scmp.lt.s32.totalorder %s609_s4, %s605_s3 }
  0x73   :  { %p612_p12 = por %p611_p11, %p610_p10 }
  0x75   :  { %p613_p13 = pnand %p612_p12, %p606_p9 }
  0x77   :  { %616 = shalt.err (!%p613_p13)
}
  0x78   :  { %92 = dma.hbm_to_vmem [thread:$0]  %s838_s6, 16, %s90_s29, [#allocation13]  }
  0x79   :  { %639 = dma.done.wait [#allocation4], 256  }
  0x7a   :  { %640 = vsyncadd [#allocation4], 4294967040 }
  0x7b   :  { %641 = dma.done.wait [#allocation7], 528  }
  0x7c   :  { %642 = vsyncadd [#allocation7], 4294966768 }
  0x7d   :  { %643 = dma.done.wait [#allocation10], 32  }
  0x7e   :  { %644 = vsyncadd [#allocation10], 4294967264 }
  0x7f   :  { %645 = dma.done.wait [#allocation13], 528  }
  0x80   :  { %646 = vsyncadd [#allocation13], 4294966768  ;;  %vm131_vm0 = vcmask 261120   ;;  %v120_v0 = vld [vmem:[#allocation6] sm:$0xff]  ;;  %v121_v1 = vld [vmem:[#allocation6 + $0x8] sm:$0xff]  ;;  %s658_s6 = smov [#allocation15]  }
  0x81   :  { %v122_v2 = vld [vmem:[#allocation6 + $0x10] sm:$0xff]  ;;  %v429_v3 = vpack.c.bf16 %v121_v1, %v120_v0  ;;  %v123_v4 = vld [vmem:[#allocation6 + $0x18] sm:$0xff]  ;;  %v387_v8 = vld [vmem:[#allocation8] ss:$0 sm:$0xff]  ;;  %s372_s8 = sshll.u32 %s658_s6, 4  ;;  %s373_s8 = int_to_ptr.vmem [resolvable:$true] %s372_s8 }
  0x82   :  { %v118_v5 = vld [vmem:[#allocation3] sm:$0xff]  ;;  %v433_v6 = vpack.c.bf16 %v123_v4, %v122_v2  ;;  %v119_v7 = vld [vmem:[#allocation3 + $0x8] sm:$0xff]  ;;  %v272_v35 = vld [vmem:[#allocation12] sm:$0xff]  ;;  %s617_s27 = scalar_lea.vmem %s373_s8, 256  ;;  %p622_p1 = scmp.lt.s32.totalorder %s373_s8, %s373_s8 }
  0x83   :  { %415 = vmatprep.mubr.msk.f32.mxu0 %vm131_vm0, %v118_v5  ;;  %430 = vmatprep.subr.bf16.mxu0 %v429_v3  ;;  %v273_v36 = vld [vmem:[#allocation12 + $0x8] sm:$0xff]  ;;  %v274_v38 = vld [vmem:[#allocation12 + $0x10] sm:$0xff]  ;;  %v275_v39 = vld [vmem:[#allocation12 + $0x18] sm:$0xff]  ;;  %p618_p0 = scmp.ne.s32.totalorder %s373_s8, %s617_s27  ;;  %p623_p2 = scmp.lt.s32.totalorder %s617_s27, %s617_s27 }
  0x84   :  { %432 = vmatpush3.bf16.msra.mxu0 %v429_v3  ;;  %v437_v37 = vpack.c.bf16 %v273_v36, %v272_v35  ;;  %v441_v40 = vpack.c.bf16 %v275_v39, %v274_v38  ;;  %v390_v48 = vld [vmem:[#allocation9] ss:$0 sm:$0xff]  ;;  %v391_v50 = vld [vmem:[#allocation11] ss:$0 sm:$0xff]  ;;  %v392_v59 = vld [vmem:[#allocation14] ss:$0 sm:$0xff] }
  0x85   :  { %434 = vmatprep.subr.bf16.mxu0 %v433_v6  ;;  %p624_p3 = por %p623_p2, %p622_p1 }
  0x86   :  { %438 = vmatprep.subr.bf16.mxu1 %v437_v37 }
  0x87   :  { %440 = vmatpush3.bf16.msra.mxu1 %v437_v37  ;;  %p625_p4 = pnand %p624_p3, %p618_p0 }
  0x88   :  { %436 = vmatpush3.bf16.msra.mxu0 %v433_v6  ;;  %442 = vmatprep.subr.bf16.mxu1 %v441_v40 }
  0x8b   :  { %416 = vmatmul.mubr.msk.f32.vlgmr.msra.gmra.mrb[0].mxu0 %vm131_vm0, %v119_v7  ;;  %444 = vmatpush3.bf16.msra.mxu1 %v441_v40 }
 0x15e   :  { %v417_v9 = vpop.f32.mrb[0].mxu0 }
 0x15f   :  { %v210_v10 = vadd.f32 %v417_v9, %v387_v8  ;;  %v204_v11 = vpop.f32.mrb[1].mxu0 }
 0x160   :  { %v205_v12 = vadd.f32 %v387_v8, %v204_v11 }
 0x161   :  { %v216_v13 = vmul.f32 0.70710677, %v210_v10  ;;  %v214_v20 = vmul.f32 0.5, %v210_v10 }
 0x162   :  { %v215_v14 = vmul.f32 0.70710677, %v205_v12  ;;  %v213_v17 = vmul.f32 0.5, %v205_v12 }
 0x163   :  { %455 = verf.f32 %v216_v13 }
 0x164   :  { %457 = verf.f32 %v215_v14 }
 0x16d   :  { %v456_v15 = vpop.eup %455 }
 0x16e   :  { %v458_v16 = vpop.eup %457  ;;  %v220_v19 = vadd.f32 1.0, %v456_v15 }
 0x16f   :  { %v219_v18 = vadd.f32 1.0, %v458_v16 }
 0x170   :  { %v222_v23 = vmul.f32 %v220_v19, %v214_v20 }
 0x171   :  { %v221_v21 = vmul.f32 %v219_v18, %v213_v17 }
 0x172   :  { %v226_v24 = vsel %vm131_vm0, %v222_v23, 0.0 }
 0x173   :  { %v223_v22 = vsel %vm131_vm0, %v221_v21, 0.0 }
 0x174   :  { %224 = vadd.xlane.f32.xlu0 %v223_v22 }
 0x178   :  { %227 = vadd.xlane.f32.xlu0 %v226_v24 }
 0x201   :  { %v225_v25 = vpop.xlane.xlu0 %224 }
 0x202   :  { %v230_v26 = vmul.f32 0.03125, %v225_v25 }
 0x204   :  { %v232_v27 = vsub.f32 %v221_v21, %v230_v26 }
 0x205   :  { %v228_v28 = vpop.xlane.xlu0 %227 }
 0x206   :  { %v231_v29 = vmul.f32 0.03125, %v228_v28  ;;  %v234_v30 = vmul.f32 %v232_v27, %v232_v27 }
 0x208   :  { %v233_v31 = vsub.f32 %v222_v23, %v231_v29  ;;  %v236_v32 = vsel %vm131_vm0, %v234_v30, 0.0 }
 0x209   :  { %237 = vadd.xlane.f32.xlu1 %v236_v32 }
 0x20a   :  { %v235_v33 = vmul.f32 %v233_v31, %v233_v31 }
 0x20c   :  { %v239_v34 = vsel %vm131_vm0, %v235_v33, 0.0 }
 0x20d   :  { %240 = vadd.xlane.f32.xlu1 %v239_v34 }
 0x296   :  { %v238_v41 = vpop.xlane.xlu1 %237 }
 0x297   :  { %v242_v42 = vmul.f32 0.03125, %v238_v41 }
 0x299   :  { %v244_v43 = vadd.f32 1e-12, %v242_v42 }
 0x29a   :  { %v241_v44 = vpop.xlane.xlu1 %240 }
 0x29b   :  { %459 = vrsqrt.f32 %v244_v43  ;;  %v243_v45 = vmul.f32 0.03125, %v241_v44 }
 0x29d   :  { %v245_v46 = vadd.f32 1e-12, %v243_v45 }
 0x29f   :  { %461 = vrsqrt.f32 %v245_v46 }
 0x2a5   :  { %v460_v47 = vpop.eup %459 }
 0x2a6   :  { %v248_v49 = vmul.f32 %v460_v47, %v232_v27 }
 0x2a8   :  { %v257_v51 = vmul.f32 %v390_v48, %v248_v49 }
 0x2a9   :  { %v462_v52 = vpop.eup %461 }
 0x2aa   :  { %v266_v53 = vadd.f32 %v391_v50, %v257_v51  ;;  %v249_v54 = vmul.f32 %v462_v52, %v233_v31 }
 0x2ac   :  { %268 = vst.msk [vmem:[#allocation2] sm:$0xff] %vm131_vm0, %v266_v53  ;;  %v258_v55 = vmul.f32 %v390_v48, %v249_v54 }
 0x2ae   :  { %v267_v56 = vadd.f32 %v391_v50, %v258_v55 }
 0x2b0   :  { %269 = vst.msk [vmem:[#allocation2 + $0x8] sm:$0xff] %vm131_vm0, %v267_v56 }
 0x2b3   :  { %v270_v57 = vld [vmem:[#allocation2] sm:$0xff] }
 0x2b4   :  { %426 = vmatprep.mubr.msk.f32.mxu1 %vm131_vm0, %v270_v57 }
 0x2b7   :  { %v271_v58 = vld [vmem:[#allocation2 + $0x8] sm:$0xff] }
 0x2b8   :  { %427 = vmatmul.mubr.msk.f32.vlgmr.msra.gmra.mrb[0].mxu1 %vm131_vm0, %v271_v58 }
 0x38b   :  { %v428_v60 = vpop.f32.mrb[0].mxu1 }
 0x38c   :  { %v362_v61 = vadd.f32 %v428_v60, %v392_v59  ;;  %v356_v62 = vpop.f32.mrb[1].mxu1 }
 0x38d   :  { %v357_v63 = vadd.f32 %v392_v59, %v356_v62 }
 0x38e   :  { %366 = vst [vmem:[#allocation15 + $0x8] sm:$0xff] %v362_v61 }
 0x38f   :  { %365 = vst [vmem:[#allocation15] sm:$0xff] %v357_v63 }
 0x390   :  { %628 = shalt.err (!%p625_p4)
}
 0x391   :  { %s629_s20 = scalar_lea.hbm %s839_s7, 256 }
 0x392   :  { %p630_p5 = scmp.ne.s32.totalorder %s839_s7, %s629_s20  ;;  %p633_p6 = scmp.lt.u32.totalorder %s629_s20, %s839_s7 }
 0x394   :  { %p635_p7 = pnand %p633_p6, %p630_p5 }
 0x396   :  { %638 = shalt.err (!%p635_p7)
}
 0x397   :  { %378 = dma.vmem_to_hbm [thread:$0]  %s373_s8, 256, %s839_s7, [#allocation5], %s651_s13, %s651_s13, %s652_s14  }
 0x398   :  { %647 = dma.done.wait [#allocation5], 256  }
 0x399   :  { %648 = vsyncadd [#allocation5], 4294967040 }
 0x39a   :  { %382 = vsyncpa [#allocation4], 1 }
 0x39b   :  { %383 = vsyncpa [#allocation7], 1 }
 0x39c   :  { %384 = vsyncpa [#allocation10], 1 }
 0x39d   :  { %385 = vsyncpa [#allocation13], 1 }
 0x39e   :  { %386 = vsyncpa [#allocation5], 1 }

// kernel: tpu_custom_call.1
= control target key start
LH: loop header
LB: loop body
LE: loop exit
PB: predicated region body
PF: predicated region fallthrough
CT: control target
= control target key end

     0   :  { %12 = vsyncpa [#allocation4], 0  ;;  %s832_s0 = inlined_call_operand.hbm [shape: f32[16,32], index: 0, kind: input, shape index: {}]   ;;  %s833_s1 = inlined_call_operand.hbm [shape: f32[32,32], index: 1, kind: input, shape index: {}]   ;;  %s834_s2 = inlined_call_operand.hbm [shape: f32[1,32], index: 2, kind: input, shape index: {}]   ;;  %s835_s3 = inlined_call_operand.hbm [shape: f32[1,32], index: 3, kind: input, shape index: {}]   ;;  %s836_s4 = inlined_call_operand.hbm [shape: f32[1,32], index: 4, kind: input, shape index: {}]   ;;  %s837_s5 = inlined_call_operand.hbm [shape: f32[32,128], index: 5, kind: input, shape index: {}]   ;;  %s838_s6 = inlined_call_operand.hbm [shape: f32[1,128], index: 6, kind: input, shape index: {}]   ;;  %s839_s7 = inlined_call_operand.hbm [shape: f32[16,128], index: 7, kind: output, shape index: {}]  }
   0x1   :  { %13 = vsyncpa [#allocation7], 0 }
   0x2   :  { %14 = vsyncpa [#allocation10], 0 }
   0x3   :  { %15 = vsyncpa [#allocation13], 0 }
   0x4   :  { %16 = vsyncpa [#allocation5], 0  ;;  %s649_s24 = smov [#allocation6]   ;;  %s650_s26 = smov [#allocation9]  }
   0x5   :  { %s34_s25 = sshll.u32 %s649_s24, 4  ;;  %s57_s27 = sshll.u32 %s650_s26, 4  ;;  %s35_s25 = int_to_ptr.vmem [resolvable:$true] %s34_s25  ;;  %s699_s27 = int_to_ptr.vmem [resolvable:$true] %s57_s27 }
   0x6   :  { %s463_s30 = scalar_lea.hbm %s833_s1, 512 }
   0x7   :  { %p464_p0 = scmp.ne.s32.totalorder %s833_s1, %s463_s30  ;;  %p467_p1 = scmp.lt.u32.totalorder %s463_s30, %s833_s1 }
   0x9   :  { %p469_p2 = pnand %p467_p1, %p464_p0 }
   0xb   :  { %472 = shalt.err (!%p469_p2)
}
   0xc   :  { %s473_s12 = scalar_lea.vmem %s35_s25, 512  ;;  %p478_p4 = scmp.lt.s32.totalorder %s35_s25, %s35_s25 }
   0xd   :  { %p474_p3 = scmp.ne.s32.totalorder %s35_s25, %s473_s12  ;;  %p479_p5 = scmp.lt.s32.totalorder %s473_s12, %s473_s12 }
   0xf   :  { %p480_p6 = por %p479_p5, %p478_p4 }
  0x11   :  { %p481_p7 = pnand %p480_p6, %p474_p3 }
  0x13   :  { %484 = shalt.err (!%p481_p7)
}
  0x14   :  { %s651_s13 = smov 128   ;;  %s652_s14 = smov 8  }
  0x15   :  { %40 = dma.hbm_to_vmem [thread:$0]  %s833_s1, 512, %s35_s25, [#allocation7], %s651_s13, %s651_s13, %s652_s14  }
  0x16   :  { %s485_s19 = scalar_lea.hbm %s835_s3, 16 }
  0x17   :  { %p486_p8 = scmp.ne.s32.totalorder %s835_s3, %s485_s19  ;;  %p489_p9 = scmp.lt.u32.totalorder %s485_s19, %s835_s3 }
  0x19   :  { %p491_p10 = pnand %p489_p9, %p486_p8 }
  0x1b   :  { %494 = shalt.err (!%p491_p10)
}
  0x1c   :  { %s495_s24 = scalar_lea.vmem %s699_s27, 16  ;;  %s499_s1 = scalar_lea.vmem %s699_s27, 32 }
  0x1d   :  { %p496_p11 = scmp.ne.s32.totalorder %s699_s27, %s495_s24  ;;  %p500_p12 = scmp.lt.s32.totalorder %s699_s27, %s699_s27 }
  0x1e   :  { %p501_p13 = scmp.lt.s32.totalorder %s499_s1, %s495_s24 }
  0x20   :  { %p502_p0 = por %p501_p13, %p500_p12 }
  0x22   :  { %p503_p1 = pnand %p502_p0, %p496_p11 }
  0x24   :  { %506 = shalt.err (!%p503_p1)
}
  0x25   :  { %60 = dma.hbm_to_vmem [thread:$0]  %s835_s3, 16, %s699_s27, [#allocation10]  }
  0x26   :  { %s653_s28 = smov [#allocation12]   ;;  %s654_s30 = smov [#allocation3]  }
  0x27   :  { %s76_s29 = sshll.u32 %s653_s28, 4  ;;  %s22_s8 = sshll.u32 %s654_s30, 4  ;;  %s77_s29 = int_to_ptr.vmem [resolvable:$true] %s76_s29  ;;  %s734_s8 = int_to_ptr.vmem [resolvable:$true] %s22_s8 }
  0x28   :  { %s507_s11 = scalar_lea.hbm %s837_s5, 512 }
  0x29   :  { %p508_p2 = scmp.ne.s32.totalorder %s837_s5, %s507_s11  ;;  %p511_p3 = scmp.lt.u32.totalorder %s507_s11, %s837_s5 }
  0x2b   :  { %p513_p4 = pnand %p511_p3, %p508_p2 }
  0x2d   :  { %516 = shalt.err (!%p513_p4)
}
  0x2e   :  { %s517_s3 = scalar_lea.vmem %s77_s29, 512  ;;  %p522_p6 = scmp.lt.s32.totalorder %s77_s29, %s77_s29 }
  0x2f   :  { %p518_p5 = scmp.ne.s32.totalorder %s77_s29, %s517_s3  ;;  %p523_p7 = scmp.lt.s32.totalorder %s517_s3, %s517_s3 }
  0x31   :  { %p524_p8 = por %p523_p7, %p522_p6 }
  0x33   :  { %p525_p9 = pnand %p524_p8, %p518_p5 }
  0x35   :  { %528 = shalt.err (!%p525_p9)
}
  0x36   :  { %82 = dma.hbm_to_vmem [thread:$0]  %s837_s5, 512, %s77_s29, [#allocation13], %s651_s13, %s651_s13, %s652_s14  }
  0x37   :  { %s529_s21 = scalar_lea.hbm %s832_s0, 256 }
  0x38   :  { %p530_p10 = scmp.ne.s32.totalorder %s832_s0, %s529_s21  ;;  %p533_p11 = scmp.lt.u32.totalorder %s529_s21, %s832_s0 }
  0x3a   :  { %p535_p12 = pnand %p533_p11, %p530_p10 }
  0x3c   :  { %538 = shalt.err (!%p535_p12)
}
  0x3d   :  { %s539_s25 = scalar_lea.vmem %s734_s8, 256  ;;  %p544_p0 = scmp.lt.s32.totalorder %s734_s8, %s734_s8 }
  0x3e   :  { %p540_p13 = scmp.ne.s32.totalorder %s734_s8, %s539_s25  ;;  %p545_p1 = scmp.lt.s32.totalorder %s539_s25, %s539_s25 }
  0x40   :  { %p546_p2 = por %p545_p1, %p544_p0 }
  0x42   :  { %p547_p3 = pnand %p546_p2, %p540_p13 }
  0x44   :  { %550 = shalt.err (!%p547_p3)
}
  0x45   :  { %28 = dma.hbm_to_vmem [thread:$0]  %s832_s0, 256, %s734_s8, [#allocation4], %s651_s13, %s651_s13, %s652_s14  }
  0x46   :  { %s655_s28 = smov [#allocation8]   ;;  %s656_s30 = smov [#allocation11]  }
  0x47   :  { %s47_s29 = sshll.u32 %s655_s28, 4  ;;  %s67_s9 = sshll.u32 %s656_s30, 4  ;;  %s48_s29 = int_to_ptr.vmem [resolvable:$true] %s47_s29  ;;  %s68_s9 = int_to_ptr.vmem [resolvable:$true] %s67_s9 }
  0x48   :  { %s551_s12 = scalar_lea.hbm %s834_s2, 16 }
  0x49   :  { %p552_p4 = scmp.ne.s32.totalorder %s834_s2, %s551_s12  ;;  %p555_p5 = scmp.lt.u32.totalorder %s551_s12, %s834_s2 }
  0x4b   :  { %p557_p6 = pnand %p555_p5, %p552_p4 }
  0x4d   :  { %560 = shalt.err (!%p557_p6)
}
  0x4e   :  { %s561_s0 = scalar_lea.vmem %s48_s29, 16  ;;  %s565_s8 = scalar_lea.vmem %s48_s29, 32 }
  0x4f   :  { %p562_p7 = scmp.ne.s32.totalorder %s48_s29, %s561_s0  ;;  %p566_p8 = scmp.lt.s32.totalorder %s48_s29, %s48_s29 }
  0x50   :  { %p567_p9 = scmp.lt.s32.totalorder %s565_s8, %s561_s0 }
  0x52   :  { %p568_p10 = por %p567_p9, %p566_p8 }
  0x54   :  { %p569_p11 = pnand %p568_p10, %p562_p7 }
  0x56   :  { %572 = shalt.err (!%p569_p11)
}
  0x57   :  { %50 = dma.hbm_to_vmem [thread:$0]  %s834_s2, 16, %s48_s29, [#allocation7]  }
  0x58   :  { %s573_s21 = scalar_lea.hbm %s836_s4, 16 }
  0x59   :  { %p574_p12 = scmp.ne.s32.totalorder %s836_s4, %s573_s21  ;;  %p577_p13 = scmp.lt.u32.totalorder %s573_s21, %s836_s4 }
  0x5b   :  { %p579_p0 = pnand %p577_p13, %p574_p12 }
  0x5d   :  { %582 = shalt.err (!%p579_p0)
}
  0x5e   :  { %s583_s25 = scalar_lea.vmem %s68_s9, 16  ;;  %s587_s5 = scalar_lea.vmem %s68_s9, 32 }
  0x5f   :  { %p584_p1 = scmp.ne.s32.totalorder %s68_s9, %s583_s25  ;;  %p588_p2 = scmp.lt.s32.totalorder %s68_s9, %s68_s9 }
  0x60   :  { %p589_p3 = scmp.lt.s32.totalorder %s587_s5, %s583_s25 }
  0x62   :  { %p590_p4 = por %p589_p3, %p588_p2 }
  0x64   :  { %p591_p5 = pnand %p590_p4, %p584_p1 }
  0x66   :  { %594 = shalt.err (!%p591_p5)
}
  0x67   :  { %70 = dma.hbm_to_vmem [thread:$0]  %s836_s4, 16, %s68_s9, [#allocation10]  }
  0x68   :  { %s657_s28 = smov [#allocation14]   ;;  %s595_s11 = scalar_lea.hbm %s838_s6, 16 }
  0x69   :  { %s89_s29 = sshll.u32 %s657_s28, 4  ;;  %p596_p6 = scmp.ne.s32.totalorder %s838_s6, %s595_s11  ;;  %s90_s29 = int_to_ptr.vmem [resolvable:$true] %s89_s29 }
  0x6a   :  { %p599_p7 = scmp.lt.u32.totalorder %s595_s11, %s838_s6 }
  0x6c   :  { %p601_p8 = pnand %p599_p7, %p596_p6 }
  0x6e   :  { %604 = shalt.err (!%p601_p8)
}
  0x6f   :  { %s605_s3 = scalar_lea.vmem %s90_s29, 16  ;;  %s609_s4 = scalar_lea.vmem %s90_s29, 32 }
  0x70   :  { %p606_p9 = scmp.ne.s32.totalorder %s90_s29, %s605_s3  ;;  %p610_p10 = scmp.lt.s32.totalorder %s90_s29, %s90_s29 }
  0x71   :  { %p611_p11 = scmp.lt.s32.totalorder %s609_s4, %s605_s3 }
  0x73   :  { %p612_p12 = por %p611_p11, %p610_p10 }
  0x75   :  { %p613_p13 = pnand %p612_p12, %p606_p9 }
  0x77   :  { %616 = shalt.err (!%p613_p13)
}
  0x78   :  { %92 = dma.hbm_to_vmem [thread:$0]  %s838_s6, 16, %s90_s29, [#allocation13]  }
  0x79   :  { %639 = dma.done.wait [#allocation4], 256  }
  0x7a   :  { %640 = vsyncadd [#allocation4], 4294967040 }
  0x7b   :  { %641 = dma.done.wait [#allocation7], 528  }
  0x7c   :  { %642 = vsyncadd [#allocation7], 4294966768 }
  0x7d   :  { %643 = dma.done.wait [#allocation10], 32  }
  0x7e   :  { %644 = vsyncadd [#allocation10], 4294967264 }
  0x7f   :  { %645 = dma.done.wait [#allocation13], 528  }
  0x80   :  { %646 = vsyncadd [#allocation13], 4294966768  ;;  %vm131_vm0 = vcmask 261120   ;;  %v120_v0 = vld [vmem:[#allocation6] sm:$0xff]  ;;  %v121_v1 = vld [vmem:[#allocation6 + $0x8] sm:$0xff]  ;;  %s658_s6 = smov [#allocation15]  }
  0x81   :  { %v122_v2 = vld [vmem:[#allocation6 + $0x10] sm:$0xff]  ;;  %v429_v3 = vpack.c.bf16 %v121_v1, %v120_v0  ;;  %v123_v4 = vld [vmem:[#allocation6 + $0x18] sm:$0xff]  ;;  %v387_v8 = vld [vmem:[#allocation8] ss:$0 sm:$0xff]  ;;  %s372_s8 = sshll.u32 %s658_s6, 4  ;;  %s373_s8 = int_to_ptr.vmem [resolvable:$true] %s372_s8 }
  0x82   :  { %v118_v5 = vld [vmem:[#allocation3] sm:$0xff]  ;;  %v433_v6 = vpack.c.bf16 %v123_v4, %v122_v2  ;;  %v119_v7 = vld [vmem:[#allocation3 + $0x8] sm:$0xff]  ;;  %v272_v35 = vld [vmem:[#allocation12] sm:$0xff]  ;;  %s617_s27 = scalar_lea.vmem %s373_s8, 256  ;;  %p622_p1 = scmp.lt.s32.totalorder %s373_s8, %s373_s8 }
  0x83   :  { %415 = vmatprep.mubr.msk.f32.mxu0 %vm131_vm0, %v118_v5  ;;  %430 = vmatprep.subr.bf16.mxu0 %v429_v3  ;;  %v273_v36 = vld [vmem:[#allocation12 + $0x8] sm:$0xff]  ;;  %v274_v38 = vld [vmem:[#allocation12 + $0x10] sm:$0xff]  ;;  %v275_v39 = vld [vmem:[#allocation12 + $0x18] sm:$0xff]  ;;  %p618_p0 = scmp.ne.s32.totalorder %s373_s8, %s617_s27  ;;  %p623_p2 = scmp.lt.s32.totalorder %s617_s27, %s617_s27 }
  0x84   :  { %432 = vmatpush3.bf16.msra.mxu0 %v429_v3  ;;  %v437_v37 = vpack.c.bf16 %v273_v36, %v272_v35  ;;  %v441_v40 = vpack.c.bf16 %v275_v39, %v274_v38  ;;  %v390_v48 = vld [vmem:[#allocation9] ss:$0 sm:$0xff]  ;;  %v391_v50 = vld [vmem:[#allocation11] ss:$0 sm:$0xff]  ;;  %v392_v59 = vld [vmem:[#allocation14] ss:$0 sm:$0xff] }
  0x85   :  { %434 = vmatprep.subr.bf16.mxu0 %v433_v6  ;;  %p624_p3 = por %p623_p2, %p622_p1 }
  0x86   :  { %438 = vmatprep.subr.bf16.mxu1 %v437_v37 }
  0x87   :  { %440 = vmatpush3.bf16.msra.mxu1 %v437_v37  ;;  %p625_p4 = pnand %p624_p3, %p618_p0 }
  0x88   :  { %436 = vmatpush3.bf16.msra.mxu0 %v433_v6  ;;  %442 = vmatprep.subr.bf16.mxu1 %v441_v40 }
  0x8b   :  { %416 = vmatmul.mubr.msk.f32.vlgmr.msra.gmra.mrb[0].mxu0 %vm131_vm0, %v119_v7  ;;  %444 = vmatpush3.bf16.msra.mxu1 %v441_v40 }
 0x15e   :  { %v417_v9 = vpop.f32.mrb[0].mxu0 }
 0x15f   :  { %v210_v10 = vadd.f32 %v417_v9, %v387_v8  ;;  %v204_v11 = vpop.f32.mrb[1].mxu0 }
 0x160   :  { %v205_v12 = vadd.f32 %v387_v8, %v204_v11 }
 0x161   :  { %v216_v13 = vmul.f32 0.70710677, %v210_v10  ;;  %v214_v20 = vmul.f32 0.5, %v210_v10 }
 0x162   :  { %v215_v14 = vmul.f32 0.70710677, %v205_v12  ;;  %v213_v17 = vmul.f32 0.5, %v205_v12 }
 0x163   :  { %455 = verf.f32 %v216_v13 }
 0x164   :  { %457 = verf.f32 %v215_v14 }
 0x16d   :  { %v456_v15 = vpop.eup %455 }
 0x16e   :  { %v458_v16 = vpop.eup %457  ;;  %v220_v19 = vadd.f32 1.0, %v456_v15 }
 0x16f   :  { %v219_v18 = vadd.f32 1.0, %v458_v16 }
 0x170   :  { %v222_v23 = vmul.f32 %v220_v19, %v214_v20 }
 0x171   :  { %v221_v21 = vmul.f32 %v219_v18, %v213_v17 }
 0x172   :  { %v226_v24 = vsel %vm131_vm0, %v222_v23, 0.0 }
 0x173   :  { %v223_v22 = vsel %vm131_vm0, %v221_v21, 0.0 }
 0x174   :  { %224 = vadd.xlane.f32.xlu0 %v223_v22 }
 0x178   :  { %227 = vadd.xlane.f32.xlu0 %v226_v24 }
 0x201   :  { %v225_v25 = vpop.xlane.xlu0 %224 }
 0x202   :  { %v230_v26 = vmul.f32 0.03125, %v225_v25 }
 0x204   :  { %v232_v27 = vsub.f32 %v221_v21, %v230_v26 }
 0x205   :  { %v228_v28 = vpop.xlane.xlu0 %227 }
 0x206   :  { %v231_v29 = vmul.f32 0.03125, %v228_v28  ;;  %v234_v30 = vmul.f32 %v232_v27, %v232_v27 }
 0x208   :  { %v233_v31 = vsub.f32 %v222_v23, %v231_v29  ;;  %v236_v32 = vsel %vm131_vm0, %v234_v30, 0.0 }
 0x209   :  { %237 = vadd.xlane.f32.xlu1 %v236_v32 }
 0x20a   :  { %v235_v33 = vmul.f32 %v233_v31, %v233_v31 }
 0x20c   :  { %v239_v34 = vsel %vm131_vm0, %v235_v33, 0.0 }
 0x20d   :  { %240 = vadd.xlane.f32.xlu1 %v239_v34 }
 0x296   :  { %v238_v41 = vpop.xlane.xlu1 %237 }
 0x297   :  { %v242_v42 = vmul.f32 0.03125, %v238_v41 }
 0x299   :  { %v244_v43 = vadd.f32 1e-12, %v242_v42 }
 0x29a   :  { %v241_v44 = vpop.xlane.xlu1 %240 }
 0x29b   :  { %459 = vrsqrt.f32 %v244_v43  ;;  %v243_v45 = vmul.f32 0.03125, %v241_v44 }
 0x29d   :  { %v245_v46 = vadd.f32 1e-12, %v243_v45 }
 0x29f   :  { %461 = vrsqrt.f32 %v245_v46 }
 0x2a5   :  { %v460_v47 = vpop.eup %459 }
 0x2a6   :  { %v248_v49 = vmul.f32 %v460_v47, %v232_v27 }
 0x2a8   :  { %v257_v51 = vmul.f32 %v390_v48, %v248_v49 }
 0x2a9   :  { %v462_v52 = vpop.eup %461 }
 0x2aa   :  { %v266_v53 = vadd.f32 %v391_v50, %v257_v51  ;;  %v249_v54 = vmul.f32 %v462_v52, %v233_v31 }
 0x2ac   :  { %268 = vst.msk [vmem:[#allocation2] sm:$0xff] %vm131_vm0, %v266_v53  ;;  %v258_v55 = vmul.f32 %v390_v48, %v249_v54 }
 0x2ae   :  { %v267_v56 = vadd.f32 %v391_v50, %v258_v55 }
 0x2b0   :  { %269 = vst.msk [vmem:[#allocation2 + $0x8] sm:$0xff] %vm131_vm0, %v267_v56 }
 0x2b3   :  { %v270_v57 = vld [vmem:[#allocation2] sm:$0xff] }
 0x2b4   :  { %426 = vmatprep.mubr.msk.f32.mxu1 %vm131_vm0, %v270_v57 }
 0x2b7   :  { %v271_v58 = vld [vmem:[#allocation2 + $0x8] sm:$0xff] }
 0x2b8   :  { %427 = vmatmul.mubr.msk.f32.vlgmr.msra.gmra.mrb[0].mxu1 %vm131_vm0, %v271_v58 }
 0x38b   :  { %v428_v60 = vpop.f32.mrb[0].mxu1 }
 0x38c   :  { %v362_v61 = vadd.f32 %v428_v60, %v392_v59  ;;  %v356_v62 = vpop.f32.mrb[1].mxu1 }
 0x38d   :  { %v357_v63 = vadd.f32 %v392_v59, %v356_v62 }
 0x38e   :  { %366 = vst [vmem:[#allocation15 + $0x8] sm:$0xff] %v362_v61 }
 0x38f   :  { %365 = vst [vmem:[#allocation15] sm:$0xff] %v357_v63 }
 0x390   :  { %628 = shalt.err (!%p625_p4)
}
 0x391   :  { %s629_s20 = scalar_lea.hbm %s839_s7, 256 }
 0x392   :  { %p630_p5 = scmp.ne.s32.totalorder %s839_s7, %s629_s20  ;;  %p633_p6 = scmp.lt.u32.totalorder %s629_s20, %s839_s7 }
 0x394   :  { %p635_p7 = pnand %p633_p6, %p630_p5 }
 0x396   :  { %638 = shalt.err (!%p635_p7)
}
 0x397   :  { %378 = dma.vmem_to_hbm [thread:$0]  %s373_s8, 256, %s839_s7, [#allocation5], %s651_s13, %s651_s13, %s652_s14  }
 0x398   :  { %647 = dma.done.wait [#allocation5], 256  }
 0x399   :  { %648 = vsyncadd [#allocation5], 4294967040 }
 0x39a   :  { %382 = vsyncpa [#allocation4], 1 }
 0x39b   :  { %383 = vsyncpa [#allocation7], 1 }
 0x39c   :  { %384 = vsyncpa [#allocation10], 1 }
 0x39d   :  { %385 = vsyncpa [#allocation13], 1 }
 0x39e   :  { %386 = vsyncpa [#allocation5], 1 }

</bundles_post_ra>
